<compile_context>
chip_gen: v6e
topology: v6e:2x2x1
jax: 0.10.0
libtpu: 0.0.40
codegen_flags: <defaults>
</compile_context>

<pallas_src>
import functools

import jax
import jax.numpy as jnp
import numpy as np
from jax.experimental import pallas as pl
from jax.experimental.pallas import tpu as pltpu


def _window_conv_kernel(*refs, L, W, HALO, left_pad, has_halo, mask_tail):
    if has_halo:
        x_ref, prev_ref, next_ref, w_ref, b_ref, o_ref = refs
    else:
        x_ref, w_ref, b_ref, o_ref = refs

    tB, tL, D = x_ref.shape
    j = pl.program_id(1)
    t0 = j * tL                                   # global sequence offset of this tile

    x = x_ref[...]                                # (tB, tL, D)
    if mask_tail:
        # Zero rows past the true sequence length so garbage from the partial last
        # tile cannot leak into valid outputs through the conv taps.
        rows = jax.lax.broadcasted_iota(jnp.int32, x.shape, 1)
        x = jnp.where(t0 + rows < L, x, jnp.zeros_like(x))

    if has_halo:
        prev = prev_ref[...]                      # global rows [t0 - HALO, t0)
        pr = jax.lax.broadcasted_iota(jnp.int32, prev.shape, 1)
        prev = jnp.where(t0 - HALO + pr >= 0, prev, jnp.zeros_like(prev))
        nxt = next_ref[...]                       # global rows [t0 + tL, t0 + tL + HALO)
        nr = jax.lax.broadcasted_iota(jnp.int32, nxt.shape, 1)
        nxt = jnp.where(t0 + tL + nr < L, nxt, jnp.zeros_like(nxt))
    else:
        prev = jnp.zeros((tB, HALO, D), dtype=x.dtype)
        nxt = jnp.zeros((tB, HALO, D), dtype=x.dtype)

    # Tile with its left/right halo; zero 'same' padding already applied via masks.
    xp = jnp.concatenate([prev, x, nxt], axis=1)  # (tB, tL + 2*HALO, D)

    # One MXU matmul per tap, accumulated in f32; bias added once at the end.
    acc = None
    for k in range(W):
        s = HALO + (k - left_pad)                 # static slice start
        xs = xp[:, s:s + tL, :].reshape(tB * tL, D)
        tap = jnp.dot(xs, w_ref[k], preferred_element_type=jnp.float32)
        acc = tap if acc is None else acc + tap
    acc = acc + b_ref[...].astype(jnp.float32)    # (1, D) broadcasts over rows
    conv = acc.reshape(tB, tL, D).astype(o_ref.dtype)
    o_ref[...] = x + conv                         # residual


def window_aware_linear_projection(x, weight, bias, window_size, *, seq_tile=512):
    """x: (B, L, D); weight: (D_out, D_in, W) [PyTorch Conv1d layout]; bias: (D,)."""
    B, L, D = x.shape
    W = int(window_size)
    assert weight.shape == (D, D, W)
    assert bias.shape == (D,)

    # PyTorch 'same' zero padding: left = (W-1)//2, right gets the remainder.
    left_pad = (W - 1) // 2
    right_pad = (W - 1) - left_pad
    # Halo rows fetched from neighbouring tiles (multiple of 8 for sublane tiling).
    HALO = ((max(left_pad, right_pad, 1) + 7) // 8) * 8

    # ---- tile selection -----------------------------------------------------
    if L <= max(seq_tile, HALO):
        tL, nL = L, 1                             # single tile: whole sequence, no halo blocks
    else:
        tL = max(HALO, (seq_tile // HALO) * HALO)  # multiple of HALO (and of 8)
        nL = pl.cdiv(L, tL)
    has_halo = nL > 1
    mask_tail = has_halo and (L % tL != 0)

    # Fold batch elements into one grid step when the per-step M dim would be tiny.
    tB = max(1, min(B, 1024 // max(tL, 1))) if (nL == 1 and L % 8 == 0) else 1
    nB = pl.cdiv(B, tB)

    # Per-tap (D_in, D_out) matrices and a (1, D) bias row.
    w_taps = jnp.transpose(weight, (2, 1, 0))     # (W, D_in, D_out)
    b2 = bias.reshape(1, D)

    x_spec = pl.BlockSpec((tB, tL, D), lambda bi, j: (bi, j, 0))
    w_spec = pl.BlockSpec((W, D, D), lambda bi, j: (0, 0, 0))
    b_spec = pl.BlockSpec((1, D), lambda bi, j: (0, 0))

    in_specs = [x_spec]
    operands = [x]
    if has_halo:
        R = tL // HALO                            # halo blocks per sequence tile
        nHB = pl.cdiv(L, HALO)
        prev_spec = pl.BlockSpec(
            (tB, HALO, D), lambda bi, j: (bi, jnp.maximum(j * R - 1, 0), 0))
        next_spec = pl.BlockSpec(
            (tB, HALO, D), lambda bi, j: (bi, jnp.minimum((j + 1) * R, nHB - 1), 0))
        in_specs += [prev_spec, next_spec]
        operands += [x, x]
    in_specs += [w_spec, b_spec]
    operands += [w_taps, b2]

    # ---- VMEM budget (double-buffered blocks + in-kernel temporaries) -------
    xi = x.dtype.itemsize
    wi = w_taps.dtype.itemsize
    est = (2 * 2 * tB * tL * D * xi                       # x tile + out tile (double-buffered)
           + (2 * 2 * tB * HALO * D * xi if has_halo else 0)
           + 2 * W * D * D * wi + 2 * D * 4               # weights + bias
           + tB * (tL + 2 * HALO) * D * xi                # halo'd tile assembled in-kernel
           + 2 * tB * tL * D * 4)                         # tap slice + f32 accumulator
    vmem_limit = int(min(max(2 * est, 32 * 1024 * 1024), 96 * 1024 * 1024))

    kernel = functools.partial(
        _window_conv_kernel, L=L, W=W, HALO=HALO, left_pad=left_pad,
        has_halo=has_halo, mask_tail=mask_tail)

    return pl.pallas_call(
        kernel,
        out_shape=jax.ShapeDtypeStruct((B, L, D), x.dtype),
        grid=(nB, nL),
        in_specs=in_specs,
        out_specs=pl.BlockSpec((tB, tL, D), lambda bi, j: (bi, j, 0)),
        compiler_params=pltpu.CompilerParams(
            dimension_semantics=("parallel", "parallel"),
            vmem_limit_bytes=vmem_limit),
    )(*operands)


def _reference(x, weight, bias, window_size):
    """Pure-JAX reference mirroring torch Conv1d(padding='same') + residual."""
    B, L, D = x.shape
    W = window_size
    left_pad = (W - 1) // 2
    right_pad = (W - 1) - left_pad
    xp = jnp.pad(x.astype(jnp.float32), ((0, 0), (left_pad, right_pad), (0, 0)))
    out = jnp.broadcast_to(bias.astype(jnp.float32), (B, L, D))
    for k in range(W):
        out = out + jnp.einsum("bld,od->blo", xp[:, k:k + L, :],
                               weight[:, :, k].astype(jnp.float32))
    return x + out.astype(x.dtype)


if __name__ == "__main__":
    key = jax.random.PRNGKey(0)

    # Demo config consistent with the module: batch=2, seq=8, text_embeddings_dim=32, window=3.
    B, L, D, W = 2, 8, 32, 3
    kx, kw, kb = jax.random.split(key, 3)
    x = jax.random.normal(kx, (B, L, D), dtype=jnp.float32)

    # 1) Faithful init (module zeroes the conv): output must equal x exactly.
    w_zero = jnp.zeros((D, D, W), dtype=jnp.float32)
    b_zero = jnp.zeros((D,), dtype=jnp.float32)
    y = window_aware_linear_projection(x, w_zero, b_zero, W)
    jax.block_until_ready(y)
    np.testing.assert_allclose(np.asarray(y), np.asarray(x), rtol=0, atol=0)

    # 2) Non-zero conv params (single-tile, batched-rows path).
    w = 0.05 * jax.random.normal(kw, (D, D, W), dtype=jnp.float32)
    b = 0.05 * jax.random.normal(kb, (D,), dtype=jnp.float32)
    y2 = window_aware_linear_projection(x, w, b, W)
    jax.block_until_ready(y2)
    np.testing.assert_allclose(np.asarray(y2), np.asarray(_reference(x, w, b, W)),
                               rtol=1e-5, atol=1e-5)

    # 3) Multi-tile path: halo exchange + partial last tile (L % tL != 0), odd window.
    B3, L3, W3 = 2, 40, 5
    k3x, k3w, k3b = jax.random.split(jax.random.PRNGKey(1), 3)
    x3 = jax.random.normal(k3x, (B3, L3, D), dtype=jnp.float32)
    w3 = 0.05 * jax.random.normal(k3w, (D, D, W3), dtype=jnp.float32)
    b3 = 0.05 * jax.random.normal(k3b, (D,), dtype=jnp.float32)
    y3 = window_aware_linear_projection(x3, w3, b3, W3, seq_tile=16)
    jax.block_until_ready(y3)
    np.testing.assert_allclose(np.asarray(y3), np.asarray(_reference(x3, w3, b3, W3)),
                               rtol=1e-5, atol=1e-5)

    # 4) Even window (asymmetric 'same' padding), multi-tile, exact tiling.
    B4, L4, W4 = 3, 48, 4
    k4x, k4w, k4b = jax.random.split(jax.random.PRNGKey(2), 3)
    x4 = jax.random.normal(k4x, (B4, L4, D), dtype=jnp.float32)
    w4 = 0.05 * jax.random.normal(k4w, (D, D, W4), dtype=jnp.float32)
    b4 = 0.05 * jax.random.normal(k4b, (D,), dtype=jnp.float32)
    y4 = window_aware_linear_projection(x4, w4, b4, W4, seq_tile=16)
    jax.block_until_ready(y4)
    np.testing.assert_allclose(np.asarray(y4), np.asarray(_reference(x4, w4, b4, W4)),
                               rtol=1e-5, atol=1e-5)

    print("KERNEL_OK")
</pallas_src>

<mosaic_0001>
module attributes {stable_mosaic.version = 11 : i64} {
  func.func @_window_conv_kernel(%arg0: i32, %arg1: i32, %arg2: memref<2x8x32xf32, #tpu.memory_space<vmem>>, %arg3: memref<3x32x32xf32, #tpu.memory_space<vmem>>, %arg4: memref<1x32xf32, #tpu.memory_space<vmem>>, %arg5: memref<2x8x32xf32, #tpu.memory_space<vmem>>) attributes {dimension_semantics = [#tpu.dimension_semantics<parallel>, #tpu.dimension_semantics<parallel>], iteration_bounds = array<i64: 1, 1>, scalar_prefetch = 0 : i64, scratch_operands = 0 : i64, tpu.core_type = #tpu.core_type<tc>, window_params = [{transform_indices = @transform_0, window_bounds = array<i64: 2, 8, 32>}, {pipeline_mode = #tpu.pipeline_mode<synchronous>, transform_indices = @transform_1, window_bounds = array<i64: 3, 32, 32>}, {pipeline_mode = #tpu.pipeline_mode<synchronous>, transform_indices = @transform_2, window_bounds = array<i64: 1, 32>}, {transform_indices = @transform_3, window_bounds = array<i64: 2, 8, 32>}]} {
    %c0 = arith.constant 0 : index
    %c0_0 = arith.constant 0 : index
    %c0_1 = arith.constant 0 : index
    %0 = vector.load %arg2[%c0, %c0_0, %c0_1] : memref<2x8x32xf32, #tpu.memory_space<vmem>>, vector<2x8x32xf32>
    %cst = arith.constant 0.000000e+00 : f32
    %1 = vector.broadcast %cst : f32 to vector<2x8x32xf32>
    %cst_2 = arith.constant 0.000000e+00 : f32
    %2 = vector.broadcast %cst_2 : f32 to vector<2x8x32xf32>
    %3 = tpu.concatenate %1, %0, %2 in 1 : vector<2x8x32xf32>, vector<2x8x32xf32>, vector<2x8x32xf32> -> vector<2x24x32xf32>
    %4 = vector.extract_strided_slice %3 {offsets = [0, 7, 0], sizes = [2, 8, 32], strides = [1, 1, 1]} : vector<2x24x32xf32> to vector<2x8x32xf32>
    %5 = vector.shape_cast %4 : vector<2x8x32xf32> to vector<16x32xf32>
    %c0_3 = arith.constant 0 : index
    %c0_4 = arith.constant 0 : index
    %c0_5 = arith.constant 0 : index
    %6 = vector.load %arg3[%c0_3, %c0_4, %c0_5] : memref<3x32x32xf32, #tpu.memory_space<vmem>>, vector<1x32x32xf32>
    %7 = vector.shape_cast %6 : vector<1x32x32xf32> to vector<32x32xf32>
    %cst_6 = arith.constant dense<0.000000e+00> : vector<16x32xf32>
    %8 = tpu.matmul %5, %7, %cst_6 {dimension_numbers = #tpu.dot_dimension_numbers<[1], [0], [0], [1], [0, 0, 1, 1], [], []>} : vector<16x32xf32>, vector<32x32xf32>, vector<16x32xf32> -> vector<16x32xf32>
    %9 = vector.extract_strided_slice %3 {offsets = [0, 8, 0], sizes = [2, 8, 32], strides = [1, 1, 1]} : vector<2x24x32xf32> to vector<2x8x32xf32>
    %10 = vector.shape_cast %9 : vector<2x8x32xf32> to vector<16x32xf32>
    %c1 = arith.constant 1 : index
    %c0_7 = arith.constant 0 : index
    %c0_8 = arith.constant 0 : index
    %11 = vector.load %arg3[%c1, %c0_7, %c0_8] : memref<3x32x32xf32, #tpu.memory_space<vmem>>, vector<1x32x32xf32>
    %12 = vector.shape_cast %11 : vector<1x32x32xf32> to vector<32x32xf32>
    %cst_9 = arith.constant dense<0.000000e+00> : vector<16x32xf32>
    %13 = tpu.matmul %10, %12, %cst_9 {dimension_numbers = #tpu.dot_dimension_numbers<[1], [0], [0], [1], [0, 0, 1, 1], [], []>} : vector<16x32xf32>, vector<32x32xf32>, vector<16x32xf32> -> vector<16x32xf32>
    %14 = arith.addf %8, %13 : vector<16x32xf32>
    %15 = vector.extract_strided_slice %3 {offsets = [0, 9, 0], sizes = [2, 8, 32], strides = [1, 1, 1]} : vector<2x24x32xf32> to vector<2x8x32xf32>
    %16 = vector.shape_cast %15 : vector<2x8x32xf32> to vector<16x32xf32>
    %c2 = arith.constant 2 : index
    %c0_10 = arith.constant 0 : index
    %c0_11 = arith.constant 0 : index
    %17 = vector.load %arg3[%c2, %c0_10, %c0_11] : memref<3x32x32xf32, #tpu.memory_space<vmem>>, vector<1x32x32xf32>
    %18 = vector.shape_cast %17 : vector<1x32x32xf32> to vector<32x32xf32>
    %cst_12 = arith.constant dense<0.000000e+00> : vector<16x32xf32>
    %19 = tpu.matmul %16, %18, %cst_12 {dimension_numbers = #tpu.dot_dimension_numbers<[1], [0], [0], [1], [0, 0, 1, 1], [], []>} : vector<16x32xf32>, vector<32x32xf32>, vector<16x32xf32> -> vector<16x32xf32>
    %20 = arith.addf %14, %19 : vector<16x32xf32>
    %c0_13 = arith.constant 0 : index
    %c0_14 = arith.constant 0 : index
    %21 = vector.load %arg4[%c0_13, %c0_14] : memref<1x32xf32, #tpu.memory_space<vmem>>, vector<1x32xf32>
    %22 = vector.broadcast %21 : vector<1x32xf32> to vector<16x32xf32>
    %23 = arith.addf %20, %22 : vector<16x32xf32>
    %24 = vector.shape_cast %23 : vector<16x32xf32> to vector<2x8x32xf32>
    %25 = arith.addf %0, %24 : vector<2x8x32xf32>
    %c0_15 = arith.constant 0 : index
    %c0_16 = arith.constant 0 : index
    %c0_17 = arith.constant 0 : index
    %26 = vector.load %arg5[%c0_15, %c0_16, %c0_17] : memref<2x8x32xf32, #tpu.memory_space<vmem>>, vector<2x8x32xf32>
    tpu.vector_store %arg5[%c0_15, %c0_16, %c0_17], %25 {strides = array<i32>} : memref<2x8x32xf32, #tpu.memory_space<vmem>>, vector<2x8x32xf32>,
    return
  }
  func.func @transform_0(%arg0: i32, %arg1: i32) -> (i32, i32, i32) {
    %c0_i32 = arith.constant 0 : i32
    %c0_i32_0 = arith.constant 0 : i32
    return %arg0, %arg1, %c0_i32 : i32, i32, i32
  }
  func.func @transform_1(%arg0: i32, %arg1: i32) -> (i32, i32, i32) {
    %c0_i32 = arith.constant 0 : i32
    %c0_i32_0 = arith.constant 0 : i32
    %c0_i32_1 = arith.constant 0 : i32
    %c0_i32_2 = arith.constant 0 : i32
    return %c0_i32, %c0_i32_0, %c0_i32_1 : i32, i32, i32
  }
  func.func @transform_2(%arg0: i32, %arg1: i32) -> (i32, i32) {
    %c0_i32 = arith.constant 0 : i32
    %c0_i32_0 = arith.constant 0 : i32
    %c0_i32_1 = arith.constant 0 : i32
    return %c0_i32, %c0_i32_0 : i32, i32
  }
  func.func @transform_3(%arg0: i32, %arg1: i32) -> (i32, i32, i32) {
    %c0_i32 = arith.constant 0 : i32
    %c0_i32_0 = arith.constant 0 : i32
    return %arg0, %arg1, %c0_i32 : i32, i32, i32
  }
}

</mosaic_0001>

<bundles_post_ra>
// kernel: tpu_custom_call.1
= control target key start
LH: loop header
LB: loop body
LE: loop exit
PB: predicated region body
PF: predicated region fallthrough
CT: control target
= control target key end

     0   :  { %8 = vsyncpa [#allocation3], 0  ;;  %s540_s0 = inlined_call_operand.hbm [shape: f32[2,8,32], index: 0, kind: input, shape index: {}]   ;;  %s541_s1 = inlined_call_operand.hbm [shape: f32[3,32,32], index: 1, kind: input, shape index: {}]   ;;  %s542_s2 = inlined_call_operand.vmem [shape: f32[1,32], index: 2, kind: input, shape index: {}]   ;;  %s543_s3 = inlined_call_operand.hbm [shape: f32[2,8,32], index: 3, kind: output, shape index: {}]  }
   0x1   :  { %9 = vsyncpa [#allocation6], 0 }
   0x2   :  { %10 = vsyncpa [#allocation4], 0  ;;  %s475_s12 = smov [#allocation2]  }
   0x3   :  { %s16_s13 = sshll.u32 %s475_s12, 4  ;;  %s17_s13 = int_to_ptr.vmem [resolvable:$true] %s16_s13 }
   0x4   :  { %s417_s14 = scalar_lea.vmem %s17_s13, 256  ;;  %p422_p1 = scmp.lt.s32.totalorder %s17_s13, %s17_s13 }
   0x5   :  { %p418_p0 = scmp.ne.s32.totalorder %s17_s13, %s417_s14  ;;  %p423_p2 = scmp.lt.s32.totalorder %s417_s14, %s417_s14 }
   0x7   :  { %p424_p3 = por %p423_p2, %p422_p1 }
   0x9   :  { %p425_p4 = pnand %p424_p3, %p418_p0 }
   0xb   :  { %428 = shalt.err (!%p425_p4)
}
   0xc   :  { %s476_s15 = smov 128   ;;  %s477_s16 = smov 8  }
   0xd   :  { %22 = dma.hbm_to_vmem [thread:$0]  %s540_s0, 256, %s17_s13, [#allocation3], %s476_s15, %s476_s15, %s477_s16  }
   0xe   :  { %s478_s19 = smov [#allocation5]  }
   0xf   :  { %s28_s20 = sshll.u32 %s478_s19, 4  ;;  %s29_s20 = int_to_ptr.vmem [resolvable:$true] %s28_s20 }
  0x10   :  { %s437_s21 = scalar_lea.vmem %s29_s20, 1536  ;;  %p442_p6 = scmp.lt.s32.totalorder %s29_s20, %s29_s20 }
  0x11   :  { %p438_p5 = scmp.ne.s32.totalorder %s29_s20, %s437_s21  ;;  %p443_p7 = scmp.lt.s32.totalorder %s437_s21, %s437_s21 }
  0x13   :  { %p444_p8 = por %p443_p7, %p442_p6 }
  0x15   :  { %p445_p9 = pnand %p444_p8, %p438_p5 }
  0x17   :  { %448 = shalt.err (!%p445_p9)
}
  0x18   :  { %34 = dma.hbm_to_vmem [thread:$0]  %s541_s1, 1536, %s29_s20, [#allocation6], %s476_s15, %s476_s15, %s477_s16  }
  0x19   :  { %469 = dma.done.wait [#allocation3], 256  }
  0x1a   :  { %470 = vsyncadd [#allocation3], 4294967040 }
  0x1b   :  { %471 = dma.done.wait [#allocation6], 1536  }
  0x1c   :  { %472 = vsyncadd [#allocation6], 4294965760  ;;  %v62_v0 = vld [vmem:[#allocation5 + $0x38] sm:$0xff]  ;;  %v61_v2 = vld [vmem:[#allocation5 + $0x30] sm:$0xff]  ;;  %v479_v7 = vmov 0.0   ;;  %vm48_vm0 = vcmask 1040384  }
  0x1d   :  { %v57_v1 = vld [vmem:[#allocation5 + $0x18] sm:$0xff]  ;;  %370 = vmatprep.subr.mxu0 %v62_v0  ;;  %v56_v3 = vld [vmem:[#allocation5 + $0x10] sm:$0xff]  ;;  %v60_v4 = vld [vmem:[#allocation5 + $0x28] sm:$0xff]  ;;  %v49_v8 = vrot.slane %v479_v7, 7  ;;  %v224_v14 = vrot.slane %v479_v7, 1  ;;  %vm63_vm1 = vcmask 261120  }
  0x1e   :  { %381 = vmatprep.subr.mxu1 %v57_v1  ;;  %371 = vmatpush3.msra.mxu0 %v62_v0  ;;  %v55_v5 = vld [vmem:[#allocation5 + $0x8] sm:$0xff]  ;;  %v513_v6 = vld [vmem:[#allocation2] sm:$0xff]  ;;  %v44_v10 = vld [vmem:[#allocation2 + $0x8] sm:$0xff]  ;;  %vm222_vm2 = vcmask 1046528   ;;  %s480_s24 = smov [#allocation7]  }
  0x1f   :  { %382 = vmatpush3.msra.mxu1 %v57_v1  ;;  %372 = vmatprep.subr.mxu0 %v61_v2  ;;  %v50_v9 = vrot.slane %v513_v6, 7  ;;  %v59_v11 = vld [vmem:[#allocation5 + $0x20] sm:$0xff]  ;;  %v223_v13 = vrot.slane %v513_v6, 1  ;;  %v52_v15 = vrot.slane %v44_v10, 7  ;;  %v232_v18 = vld [vmem:[#allocation5 + $0x58] sm:$0xff]  ;;  %v231_v20 = vld [vmem:[#allocation5 + $0x50] sm:$0xff] }
  0x20   :  { %383 = vmatprep.subr.mxu1 %v56_v3  ;;  %373 = vmatpush3.msra.mxu0 %v61_v2  ;;  %v54_v12 = vld [vmem:[#allocation5] sm:$0xff]  ;;  %v226_v21 = vrot.slane %v44_v10, 1  ;;  %v230_v22 = vld [vmem:[#allocation5 + $0x48] sm:$0xff]  ;;  %v351_v31 = vld [vmem:[%s542_s2] ss:$0 sm:$0xff]  ;;  %s332_s25 = sshll.u32 %s480_s24, 4  ;;  %s333_s25 = int_to_ptr.vmem [resolvable:$true] %s332_s25 }
  0x21   :  { %384 = vmatpush3.msra.mxu1 %v56_v3  ;;  %374 = vmatprep.subr.mxu0 %v60_v4  ;;  %v51_v16 = vsel %vm48_vm0, %v49_v8, %v50_v9  ;;  %v53_v17 = vsel %vm48_vm0, %v49_v8, %v52_v15  ;;  %v225_v19 = vsel %vm222_vm2, %v223_v13, %v224_v14  ;;  %v229_v23 = vld [vmem:[#allocation5 + $0x40] sm:$0xff]  ;;  %s449_s26 = scalar_lea.vmem %s333_s25, 256  ;;  %p454_p11 = scmp.lt.s32.totalorder %s333_s25, %s333_s25 }
  0x22   :  { %385 = vmatprep.subr.mxu1 %v55_v5  ;;  %375 = vmatpush3.msra.mxu0 %v60_v4  ;;  %v227_v24 = vsel %vm222_vm2, %v226_v21, %v224_v14  ;;  %p450_p10 = scmp.ne.s32.totalorder %s333_s25, %s449_s26  ;;  %p455_p12 = scmp.lt.s32.totalorder %s449_s26, %s449_s26 }
  0x23   :  { %386 = vmatpush3.msra.mxu1 %v55_v5  ;;  %376 = vmatprep.subr.mxu0 %v59_v11 }
  0x24   :  { %387 = vmatprep.subr.mxu1 %v54_v12  ;;  %377 = vmatpush3.msra.mxu0 %v59_v11  ;;  %p456_p13 = por %p455_p12, %p454_p11 }
  0x25   :  { %378 = vmatprep.mubr.msk.f32.mxu0 %vm63_vm1, %v513_v6  ;;  %388 = vmatpush3.msra.mxu1 %v54_v12 }
  0x26   :  { %389 = vmatprep.mubr.msk.f32.mxu1 %vm63_vm1, %v51_v16  ;;  %379 = vmatmul.mubr.msk.f32.vlgmr.msra.gmra.mxu0 %vm63_vm1, %v44_v10  ;;  %p457_p0 = pnand %p456_p13, %p450_p10 }
  0x27   :  { %390 = vmatmul.mubr.msk.f32.vlgmr.msra.gmra.mxu1 %vm63_vm1, %v53_v17  ;;  %392 = vmatprep.subr.mxu0 %v232_v18 }
  0x28   :  { %400 = vmatprep.mubr.msk.f32.mxu0 %vm63_vm1, %v225_v19  ;;  %393 = vmatpush3.msra.mxu0 %v232_v18 }
  0x29   :  { %394 = vmatprep.subr.mxu0 %v231_v20 }
  0x2a   :  { %395 = vmatpush3.msra.mxu0 %v231_v20 }
  0x2b   :  { %396 = vmatprep.subr.mxu0 %v230_v22 }
  0x2c   :  { %397 = vmatpush3.msra.mxu0 %v230_v22 }
  0x2d   :  { %398 = vmatprep.subr.mxu0 %v229_v23 }
  0x2e   :  { %399 = vmatpush3.msra.mxu0 %v229_v23 }
  0x2f   :  { %401 = vmatmul.mubr.msk.f32.vlgmr.msra.gmra.mxu0 %vm63_vm1, %v227_v24 }
  0xe6   :  { %v380_v25 = vpop.f32.mrf.mxu0 }
  0xe7   :  { %v391_v26 = vpop.f32.mrf.mxu1 }
  0xe8   :  { %v134_v27 = vpop.f32.mrf.mxu0  ;;  %v219_v29 = vadd.f32 %v391_v26, %v380_v25 }
  0xe9   :  { %v213_v28 = vpop.f32.mrf.mxu1 }
  0xea   :  { %v214_v32 = vadd.f32 %v213_v28, %v134_v27 }
  0xef   :  { %v402_v30 = vpop.f32.mrf.mxu0 }
  0xf0   :  { %v313_v33 = vadd.f32 %v402_v30, %v219_v29 }
  0xf1   :  { %v303_v34 = vpop.f32.mrf.mxu0 }
  0xf2   :  { %v322_v35 = vadd.f32 %v351_v31, %v313_v33  ;;  %v312_v36 = vadd.f32 %v303_v34, %v214_v32 }
  0xf4   :  { %v324_v37 = vadd.f32 %v322_v35, %v44_v10  ;;  %v321_v38 = vadd.f32 %v351_v31, %v312_v36 }
  0xf6   :  { %326 = vst.msk [vmem:[#allocation7 + $0x8] sm:$0xff] %vm63_vm1, %v324_v37  ;;  %v323_v39 = vadd.f32 %v321_v38, %v513_v6 }
  0xf8   :  { %325 = vst.msk [vmem:[#allocation7] sm:$0xff] %vm63_vm1, %v323_v39 }
  0xf9   :  { %460 = shalt.err (!%p457_p0)
}
  0xfa   :  { %338 = dma.vmem_to_hbm [thread:$0]  %s333_s25, 256, %s543_s3, [#allocation4], %s476_s15, %s476_s15, %s477_s16  }
  0xfb   :  { %473 = dma.done.wait [#allocation4], 256  }
  0xfc   :  { %474 = vsyncadd [#allocation4], 4294967040 }
  0xfd   :  { %342 = vsyncpa [#allocation3], 1 }
  0xfe   :  { %343 = vsyncpa [#allocation6], 1 }
  0xff   :  { %344 = vsyncpa [#allocation4], 1 }

</bundles_post_ra>
